<compile_context>
chip_gen: v6e
topology: v6e:2x2x1
jax: 0.10.0
libtpu: 0.0.40
codegen_flags: <defaults>
</compile_context>

<pallas_src>
from functools import partial

import jax
import jax.numpy as jnp
from jax.experimental import pallas as pl
from jax.experimental.pallas import tpu as pltpu


# ----------------------------------------------------------------------------
# Kernel: gated-attention MIL aggregator, TILE_B bags per grid step
# ----------------------------------------------------------------------------
def gated_attention_kernel(h_ref, wvu_ref, bvu_ref, ww_ref, bw_ref,
                           wf_ref, bf_ref, yprob_ref, inst_ref, *, L):
    tb, k, nf = h_ref.shape
    nc = yprob_ref.shape[-1]

    h = h_ref[...]                                   # (tb, k, nf)
    hf = h.reshape(tb * k, nf)                       # merge leading dims (cheap)

    # Fused attention_V + attention_U: one (tb*k, nf) @ (nf, 2L) MXU matmul.
    a = jnp.dot(hf, wvu_ref[...], preferred_element_type=jnp.float32) + bvu_ref[...]
    a_v = jnp.tanh(a[:, :L])                         # lane-aligned when L % 128 == 0
    a_u = jax.nn.sigmoid(a[:, L:])
    gated = (a_v * a_u).reshape(tb, k, L)            # (tb, k, L)

    # attention_W (L -> 1): elementwise multiply + lane reduce instead of a
    # degenerate (L, 1) MXU matmul.
    scores = jnp.sum(gated * ww_ref[...], axis=-1) + bw_ref[...]        # (tb, k)

    # softmax over the instance axis within each bag (lane reduces + EUP recip)
    m = jnp.max(scores, axis=-1, keepdims=True)
    e = jnp.exp(scores - m)
    attn = e * pl.reciprocal(jnp.sum(e, axis=-1, keepdims=True), approx=True)

    if nc == 1:
        # Reassociate the head: (attn @ h) @ wf^T == attn @ (h @ wf^T).
        # With nc == 1, h @ wf^T is just an elementwise multiply + lane reduce,
        # so the whole classifier head stays on VPU/XLU (no M=1 MXU matmuls).
        hwf = jnp.sum(h * wf_ref[...], axis=-1)                          # (tb, k)
        logit = jnp.sum(attn * hwf, axis=-1, keepdims=True)              # (tb, 1)
    else:
        # Generic path: Z = A @ v per bag, then fc.
        z = jnp.einsum("bk,bkf->bf", attn, h,
                       preferred_element_type=jnp.float32)               # (tb, nf)
        logit = jax.lax.dot_general(
            z, wf_ref[...], (((1,), (1,)), ((), ())),
            preferred_element_type=jnp.float32)                          # (tb, nc)

    yprob_ref[...] = jax.nn.sigmoid(logit + bf_ref[...]).astype(yprob_ref.dtype)
    inst_ref[...] = jax.nn.sigmoid(scores).astype(inst_ref.dtype)


def _pick_tile_b(B, k):
    # Keep blocks (8, 128)-legal: tile_b must be a multiple of 8 or equal B.
    # Aim for >= 128 matmul rows per step but keep >= 2 grid steps when
    # possible so megacore ("parallel") has work to split.
    if B % 8 != 0:
        return B
    tile = 8
    while (tile * k < 128) and (B % (tile * 2) == 0) and (tile * 2 < B):
        tile *= 2
    return tile


def linear_classifier_batched(h_bags, params, tile_b=None):
    """h_bags: (B, k, nf) -> (Y_prob (B, nc), instance_scores (B, k))."""
    B, k, nf = h_bags.shape
    L = params["wv"].shape[1]
    nc = params["wf"].shape[0]
    if tile_b is None:
        tile_b = _pick_tile_b(B, k)
    assert B % tile_b == 0, "batch of bags must be divisible by tile_b"

    # Fuse the V / U projection weights once in the wrapper (tiny XLA concat).
    wvu = jnp.concatenate([params["wv"], params["wu"]], axis=1)   # (nf, 2L)
    bvu = jnp.concatenate([params["bv"], params["bu"]], axis=1)   # (1, 2L)

    full2d = lambda b: (0, 0)
    kernel = partial(gated_attention_kernel, L=L)
    y_prob, inst = pl.pallas_call(
        kernel,
        out_shape=(
            jax.ShapeDtypeStruct((B, nc), jnp.float32),
            jax.ShapeDtypeStruct((B, k), jnp.float32),
        ),
        grid=(B // tile_b,),
        in_specs=[
            pl.BlockSpec((tile_b, k, nf), lambda b: (b, 0, 0)),
            pl.BlockSpec((nf, 2 * L), full2d), pl.BlockSpec((1, 2 * L), full2d),
            pl.BlockSpec((1, L), full2d), pl.BlockSpec((1, 1), full2d),
            pl.BlockSpec((nc, nf), full2d), pl.BlockSpec((1, nc), full2d),
        ],
        out_specs=(
            pl.BlockSpec((tile_b, nc), lambda b: (b, 0)),
            pl.BlockSpec((tile_b, k), lambda b: (b, 0)),
        ),
        compiler_params=pltpu.CompilerParams(dimension_semantics=("parallel",)),
    )(h_bags, wvu, bvu, params["ww"], params["bw"], params["wf"], params["bf"])
    return y_prob, inst


def linear_classifier_forward(v, params):
    """Matches Linear_Classifier.forward: v (k, nf) -> (Y_prob (1, nc), scores (k,))."""
    y_prob, inst = linear_classifier_batched(v[None], params)
    return y_prob, inst[0]


# ----------------------------------------------------------------------------
# Pure-JAX reference (for numerical verification)
# ----------------------------------------------------------------------------
def reference_forward(h_bags, params):
    a_v = jnp.tanh(h_bags @ params["wv"] + params["bv"])                # (B,k,L)
    a_u = jax.nn.sigmoid(h_bags @ params["wu"] + params["bu"])          # (B,k,L)
    scores = jnp.sum(a_v * a_u * params["ww"], axis=-1) + params["bw"][0, 0]
    attn = jax.nn.softmax(scores, axis=-1)                              # (B,k)
    z = jnp.einsum("bk,bkf->bf", attn, h_bags)                          # (B,nf)
    y_prob = jax.nn.sigmoid(z @ params["wf"].T + params["bf"])          # (B,nc)
    return y_prob, jax.nn.sigmoid(scores)


if __name__ == "__main__":
    # Small deterministic setup: 16 bags of k=8 instances with nf=32 features.
    B, k, nf, L, nc = 16, 8, 32, 128, 1

    key = jax.random.PRNGKey(0)
    ks = jax.random.split(key, 10)
    params = {
        # nn.Linear(nf, L) stored transposed: w (nf, L), b (1, L)
        "wv": 0.1 * jax.random.normal(ks[0], (nf, L), jnp.float32),
        "bv": 0.1 * jax.random.normal(ks[1], (1, L), jnp.float32),
        "wu": 0.1 * jax.random.normal(ks[2], (nf, L), jnp.float32),
        "bu": 0.1 * jax.random.normal(ks[3], (1, L), jnp.float32),
        # nn.Linear(L, 1): weight (1, L), bias (1, 1)
        "ww": 0.1 * jax.random.normal(ks[4], (1, L), jnp.float32),
        "bw": 0.1 * jax.random.normal(ks[5], (1, 1), jnp.float32),
        # nn.Linear(nf, nc): weight (nc, nf), bias (1, nc)
        "wf": 0.1 * jax.random.normal(ks[6], (nc, nf), jnp.float32),
        "bf": 0.1 * jax.random.normal(ks[7], (1, nc), jnp.float32),
    }

    h_bags = jax.random.normal(ks[8], (B, k, nf), jnp.float32)

    # Batched path (grid=(2,), TILE_B=8 bags per step)
    y_prob, inst = linear_classifier_batched(h_bags, params)
    jax.block_until_ready((y_prob, inst))
    assert y_prob.shape == (B, nc)
    assert inst.shape == (B, k)

    # Numerical check against the pure-JAX reference (approx reciprocal -> loose tol)
    y_ref, i_ref = reference_forward(h_bags, params)
    err_y = float(jnp.max(jnp.abs(y_prob - y_ref)))
    err_i = float(jnp.max(jnp.abs(inst - i_ref)))
    assert err_y < 5e-3 and err_i < 5e-3, (err_y, err_i)

    # Single-bag path matching the nn.Module signature: v is (k, nf)
    v = jax.random.normal(ks[9], (k, nf), jnp.float32)
    y1, s1 = linear_classifier_forward(v, params)
    jax.block_until_ready((y1, s1))
    assert y1.shape == (1, nc) and s1.shape == (k,)

    print("KERNEL_OK")
</pallas_src>

<mosaic_0001>
module attributes {stable_mosaic.version = 11 : i64} {
  func.func @gated_attention_kernel(%arg0: i32, %arg1: memref<8x8x32xf32, #tpu.memory_space<vmem>>, %arg2: memref<32x256xf32, #tpu.memory_space<vmem>>, %arg3: memref<1x256xf32, #tpu.memory_space<vmem>>, %arg4: memref<1x128xf32, #tpu.memory_space<vmem>>, %arg5: memref<1x1xf32, #tpu.memory_space<vmem>>, %arg6: memref<1x32xf32, #tpu.memory_space<vmem>>, %arg7: memref<1x1xf32, #tpu.memory_space<vmem>>, %arg8: memref<8x1xf32, #tpu.memory_space<vmem>>, %arg9: memref<8x8xf32, #tpu.memory_space<vmem>>) attributes {dimension_semantics = [#tpu.dimension_semantics<parallel>], iteration_bounds = array<i64: 2>, scalar_prefetch = 0 : i64, scratch_operands = 0 : i64, tpu.core_type = #tpu.core_type<tc>, window_params = [{transform_indices = @transform_0, window_bounds = array<i64: 8, 8, 32>}, {pipeline_mode = #tpu.pipeline_mode<synchronous>, transform_indices = @transform_1, window_bounds = array<i64: 32, 256>}, {pipeline_mode = #tpu.pipeline_mode<synchronous>, transform_indices = @transform_2, window_bounds = array<i64: 1, 256>}, {pipeline_mode = #tpu.pipeline_mode<synchronous>, transform_indices = @transform_3, window_bounds = array<i64: 1, 128>}, {pipeline_mode = #tpu.pipeline_mode<synchronous>, transform_indices = @transform_4, window_bounds = array<i64: 1, 1>}, {pipeline_mode = #tpu.pipeline_mode<synchronous>, transform_indices = @transform_5, window_bounds = array<i64: 1, 32>}, {pipeline_mode = #tpu.pipeline_mode<synchronous>, transform_indices = @transform_6, window_bounds = array<i64: 1, 1>}, {transform_indices = @transform_7, window_bounds = array<i64: 8, 1>}, {transform_indices = @transform_8, window_bounds = array<i64: 8, 8>}]} {
    %c0 = arith.constant 0 : index
    %c0_0 = arith.constant 0 : index
    %c0_1 = arith.constant 0 : index
    %0 = vector.load %arg1[%c0, %c0_0, %c0_1] : memref<8x8x32xf32, #tpu.memory_space<vmem>>, vector<8x8x32xf32>
    %1 = vector.shape_cast %0 : vector<8x8x32xf32> to vector<64x32xf32>
    %c0_2 = arith.constant 0 : index
    %c0_3 = arith.constant 0 : index
    %2 = vector.load %arg2[%c0_2, %c0_3] : memref<32x256xf32, #tpu.memory_space<vmem>>, vector<32x256xf32>
    %cst = arith.constant dense<0.000000e+00> : vector<64x256xf32>
    %3 = tpu.matmul %1, %2, %cst {dimension_numbers = #tpu.dot_dimension_numbers<[1], [0], [0], [1], [0, 0, 1, 1], [], []>} : vector<64x32xf32>, vector<32x256xf32>, vector<64x256xf32> -> vector<64x256xf32>
    %c0_4 = arith.constant 0 : index
    %c0_5 = arith.constant 0 : index
    %4 = vector.load %arg3[%c0_4, %c0_5] : memref<1x256xf32, #tpu.memory_space<vmem>>, vector<1x256xf32>
    %5 = vector.broadcast %4 : vector<1x256xf32> to vector<64x256xf32>
    %6 = arith.addf %3, %5 : vector<64x256xf32>
    %7 = vector.extract_strided_slice %6 {offsets = [0, 0], sizes = [64, 128], strides = [1, 1]} : vector<64x256xf32> to vector<64x128xf32>
    %8 = math.tanh %7 : vector<64x128xf32>
    %9 = vector.extract_strided_slice %6 {offsets = [0, 128], sizes = [64, 128], strides = [1, 1]} : vector<64x256xf32> to vector<64x128xf32>
    %10 = arith.negf %9 : vector<64x128xf32>
    %11 = math.exp %10 : vector<64x128xf32>
    %cst_6 = arith.constant 1.000000e+00 : f32
    %12 = vector.broadcast %cst_6 : f32 to vector<64x128xf32>
    %13 = arith.addf %12, %11 : vector<64x128xf32>
    %14 = arith.divf %12, %13 : vector<64x128xf32>
    %15 = arith.mulf %8, %14 : vector<64x128xf32>
    %16 = vector.shape_cast %15 : vector<64x128xf32> to vector<8x8x128xf32>
    %c0_7 = arith.constant 0 : index
    %c0_8 = arith.constant 0 : index
    %17 = vector.load %arg4[%c0_7, %c0_8] : memref<1x128xf32, #tpu.memory_space<vmem>>, vector<1x128xf32>
    %18 = vector.shape_cast %17 : vector<1x128xf32> to vector<1x1x128xf32>
    %19 = vector.broadcast %18 : vector<1x1x128xf32> to vector<8x8x128xf32>
    %20 = arith.mulf %16, %19 : vector<8x8x128xf32>
    %cst_9 = arith.constant dense<0.000000e+00> : vector<8x8xf32>
    %21 = vector.multi_reduction <add>, %20, %cst_9 [2] : vector<8x8x128xf32> to vector<8x8xf32>
    %c0_10 = arith.constant 0 : index
    %c0_11 = arith.constant 0 : index
    %22 = vector.load %arg5[%c0_10, %c0_11] : memref<1x1xf32, #tpu.memory_space<vmem>>, vector<1x1xf32>
    %23 = vector.broadcast %22 : vector<1x1xf32> to vector<8x8xf32>
    %24 = arith.addf %21, %23 : vector<8x8xf32>
    %cst_12 = arith.constant dense<0xFF800000> : vector<8xf32>
    %25 = vector.multi_reduction <maximumf>, %24, %cst_12 [1] : vector<8x8xf32> to vector<8xf32>
    %26 = vector.shape_cast %25 : vector<8xf32> to vector<8x1xf32>
    %27 = vector.broadcast %26 : vector<8x1xf32> to vector<8x8xf32>
    %28 = arith.subf %24, %27 : vector<8x8xf32>
    %29 = math.exp %28 : vector<8x8xf32>
    %cst_13 = arith.constant dense<0.000000e+00> : vector<8xf32>
    %30 = vector.multi_reduction <add>, %29, %cst_13 [1] : vector<8x8xf32> to vector<8xf32>
    %31 = vector.shape_cast %30 : vector<8xf32> to vector<8x1xf32>
    %32 = tpu.reciprocal %31 {approx = true} : vector<8x1xf32> -> vector<8x1xf32>
    %33 = vector.broadcast %32 : vector<8x1xf32> to vector<8x8xf32>
    %34 = arith.mulf %29, %33 : vector<8x8xf32>
    %c0_14 = arith.constant 0 : index
    %c0_15 = arith.constant 0 : index
    %35 = vector.load %arg6[%c0_14, %c0_15] : memref<1x32xf32, #tpu.memory_space<vmem>>, vector<1x32xf32>
    %36 = vector.shape_cast %35 : vector<1x32xf32> to vector<1x1x32xf32>
    %37 = vector.broadcast %36 : vector<1x1x32xf32> to vector<8x8x32xf32>
    %38 = arith.mulf %0, %37 : vector<8x8x32xf32>
    %cst_16 = arith.constant dense<0.000000e+00> : vector<8x8xf32>
    %39 = vector.multi_reduction <add>, %38, %cst_16 [2] : vector<8x8x32xf32> to vector<8x8xf32>
    %40 = arith.mulf %34, %39 : vector<8x8xf32>
    %cst_17 = arith.constant dense<0.000000e+00> : vector<8xf32>
    %41 = vector.multi_reduction <add>, %40, %cst_17 [1] : vector<8x8xf32> to vector<8xf32>
    %42 = vector.shape_cast %41 : vector<8xf32> to vector<8x1xf32>
    %c0_18 = arith.constant 0 : index
    %c0_19 = arith.constant 0 : index
    %43 = vector.load %arg7[%c0_18, %c0_19] : memref<1x1xf32, #tpu.memory_space<vmem>>, vector<1x1xf32>
    %44 = vector.broadcast %43 : vector<1x1xf32> to vector<8x1xf32>
    %45 = arith.addf %42, %44 : vector<8x1xf32>
    %46 = arith.negf %45 : vector<8x1xf32>
    %47 = math.exp %46 : vector<8x1xf32>
    %cst_20 = arith.constant 1.000000e+00 : f32
    %48 = vector.broadcast %cst_20 : f32 to vector<8x1xf32>
    %49 = arith.addf %48, %47 : vector<8x1xf32>
    %50 = arith.divf %48, %49 : vector<8x1xf32>
    %c0_21 = arith.constant 0 : index
    %c0_22 = arith.constant 0 : index
    %51 = vector.load %arg8[%c0_21, %c0_22] : memref<8x1xf32, #tpu.memory_space<vmem>>, vector<8x1xf32>
    tpu.vector_store %arg8[%c0_21, %c0_22], %50 {strides = array<i32>} : memref<8x1xf32, #tpu.memory_space<vmem>>, vector<8x1xf32>,
    %52 = arith.negf %24 : vector<8x8xf32>
    %53 = math.exp %52 : vector<8x8xf32>
    %cst_23 = arith.constant 1.000000e+00 : f32
    %54 = vector.broadcast %cst_23 : f32 to vector<8x8xf32>
    %55 = arith.addf %54, %53 : vector<8x8xf32>
    %56 = arith.divf %54, %55 : vector<8x8xf32>
    %c0_24 = arith.constant 0 : index
    %c0_25 = arith.constant 0 : index
    %57 = vector.load %arg9[%c0_24, %c0_25] : memref<8x8xf32, #tpu.memory_space<vmem>>, vector<8x8xf32>
    tpu.vector_store %arg9[%c0_24, %c0_25], %56 {strides = array<i32>} : memref<8x8xf32, #tpu.memory_space<vmem>>, vector<8x8xf32>,
    return
  }
  func.func @transform_0(%arg0: i32) -> (i32, i32, i32) {
    %c0_i32 = arith.constant 0 : i32
    %c0_i32_0 = arith.constant 0 : i32
    %c0_i32_1 = arith.constant 0 : i32
    return %arg0, %c0_i32, %c0_i32_0 : i32, i32, i32
  }
  func.func @transform_1(%arg0: i32) -> (i32, i32) {
    %c0_i32 = arith.constant 0 : i32
    %c0_i32_0 = arith.constant 0 : i32
    %c0_i32_1 = arith.constant 0 : i32
    return %c0_i32, %c0_i32_0 : i32, i32
  }
  func.func @transform_2(%arg0: i32) -> (i32, i32) {
    %c0_i32 = arith.constant 0 : i32
    %c0_i32_0 = arith.constant 0 : i32
    %c0_i32_1 = arith.constant 0 : i32
    return %c0_i32, %c0_i32_0 : i32, i32
  }
  func.func @transform_3(%arg0: i32) -> (i32, i32) {
    %c0_i32 = arith.constant 0 : i32
    %c0_i32_0 = arith.constant 0 : i32
    %c0_i32_1 = arith.constant 0 : i32
    return %c0_i32, %c0_i32_0 : i32, i32
  }
  func.func @transform_4(%arg0: i32) -> (i32, i32) {
    %c0_i32 = arith.constant 0 : i32
    %c0_i32_0 = arith.constant 0 : i32
    %c0_i32_1 = arith.constant 0 : i32
    return %c0_i32, %c0_i32_0 : i32, i32
  }
  func.func @transform_5(%arg0: i32) -> (i32, i32) {
    %c0_i32 = arith.constant 0 : i32
    %c0_i32_0 = arith.constant 0 : i32
    %c0_i32_1 = arith.constant 0 : i32
    return %c0_i32, %c0_i32_0 : i32, i32
  }
  func.func @transform_6(%arg0: i32) -> (i32, i32) {
    %c0_i32 = arith.constant 0 : i32
    %c0_i32_0 = arith.constant 0 : i32
    %c0_i32_1 = arith.constant 0 : i32
    return %c0_i32, %c0_i32_0 : i32, i32
  }
  func.func @transform_7(%arg0: i32) -> (i32, i32) {
    %c0_i32 = arith.constant 0 : i32
    %c0_i32_0 = arith.constant 0 : i32
    return %arg0, %c0_i32 : i32, i32
  }
  func.func @transform_8(%arg0: i32) -> (i32, i32) {
    %c0_i32 = arith.constant 0 : i32
    %c0_i32_0 = arith.constant 0 : i32
    return %arg0, %c0_i32 : i32, i32
  }
}

</mosaic_0001>

<bundles_post_ra>
// kernel: tpu_custom_call.1
= control target key start
LH: loop header
LB: loop body
LE: loop exit
PB: predicated region body
PF: predicated region fallthrough
CT: control target
= control target key end

     0   :  { %s1979_s0 = inlined_call_operand.hbm [shape: f32[16,8,32], index: 0, kind: input, shape index: {}]   ;;  %s1980_s1 = inlined_call_operand.hbm [shape: f32[32,256], index: 1, kind: input, shape index: {}]   ;;  %s1981_s2 = inlined_call_operand.vmem [shape: f32[1,256], index: 2, kind: input, shape index: {}]   ;;  %s1982_s3 = inlined_call_operand.vmem [shape: f32[1,128], index: 3, kind: input, shape index: {}]   ;;  %s1983_s4 = inlined_call_operand.<no memory space> [shape: f32[1,1], index: 4, kind: input, shape index: {}]   ;;  %s1984_s5 = inlined_call_operand.vmem [shape: f32[1,32], index: 5, kind: input, shape index: {}]   ;;  %s1985_s7 = inlined_call_operand.vmem [shape: f32[16,1], index: 7, kind: output, shape index: {0}]   ;;  %s1986_s8 = inlined_call_operand.vmem [shape: f32[16,8], index: 8, kind: output, shape index: {1}]   ;;  %s1987_s6 = inlined_call_operand.<no memory space> [shape: f32[1,1], index: 6, kind: input, shape index: {}]  }
   0x1   :  { %v14_v0 = vstv %s1983_s4  ;;  %v16_v1 = vstv %s1987_s6 }
   0x2   :  { %15 = vst [vmem:[#allocation2] sm:$0x1] %v14_v0  ;;  %17 = vst [vmem:[#allocation3] sm:$0x1] %v16_v1 }
   0x3   :  { %18 = vsyncpa [#allocation5], 0 }
   0x4   :  { %20 = vsyncpa [#allocation5 + $0x1], 0 }
   0x5   :  { %21 = vsyncpa [#allocation7], 0  ;;  %s1591_s9 = smov 0   ;;  %s1593_s10 = smov 0  }
   0x6   :  { %s1595_s11 = smov 0   ;;  %s1597_s12 = smov 0  }
   0x7 LB: > { %s1610_s4 = sadd.s32 4294967295, %s1530_s12   ;;  %p47_p0 = scmp.ne.s32.totalorder %s1522_s10, %s1518_s9  ;;  %s1530_s12 = sphi %s1597_s12, %s2002_s12   ;;  %s1526_s11 = sphi %s1595_s11, %s2001_s11   ;;  %s1522_s10 = sphi %s1593_s10, %s2000_s10   ;;  %s1518_s9 = sphi %s1591_s9, %s1999_s9  }
   0x8   : > { %p1988_p1 = scmp.eq.s32.totalorder %s1610_s4, 0  ;;  %p1227_p2 = scmp.ge.s32.totalorder %s1530_s12, 1 }
   0x9   : > { %p236_p3 = scmp.lt.s32.totalorder %s1530_s12, 3  ;;  %s1532_s14 = smov [#allocation6]  }
   0xa   : > { %p1618_p4 = por %p1988_p1, %p47_p0  ;;  %s248_s15 = sshll.u32 %s1532_s14, 4  ;;  %s249_s15 = int_to_ptr.vmem [resolvable:$true] %s248_s15 }
   0xb   : > { %p1622_p5 = pnand %p1227_p2, %p236_p3  ;;  %s1635_s17 = sadd.s32 1, %s1530_s12  }
   0xc   : > { %s1991_s6 = scalar_select %p1618_p4, 1, 0 }
   0xd   : > { %s1992_s13 = scalar_select %p1622_p5, 1, 0 }
   0xe   : > { %p1284_p6 = pneg %p1622_p5  ;;  %s34_s18 = sadd.s32 1, %s1526_s11 }
   0xf   : > { %s31_s19 = ssub.s32 %s1530_s12, %s1635_s17  ;;  %s1449_s20 = scalar_lea.vmem %s249_s15, 1024 }
  0x10   : > { %p1630_p7 = pnand %p1284_p6, %p1988_p1  ;;  %p1450_p9 = scmp.ne.s32.totalorder %s249_s15, %s1449_s20 }
  0x11   : > { %p1457_p12 = scmp.lt.s32.totalorder %s249_s15, %s249_s15  ;;  %p1458_p13 = scmp.lt.s32.totalorder %s1449_s20, %s1449_s20 }
  0x12   : > { %p1440_p8 = pneg %p1630_p7 }
  0x13   : > { %p1459_p0 = por %p1458_p13, %p1457_p12 }
  0x14   : > { %p1452_p10 = pnand %p1450_p9, %p1440_p8 }
  0x16   : > { %p1453_p11 = pneg %p1452_p10 }
  0x18   : > { %p1460_p2 = pnand %p1459_p0, %p1453_p11 }
  0x1a   : > { %1463 = shalt.err (!%p1460_p2)
}
  0x1b   : > { %s1533_s21 = smov 256   ;;  %s1534_s22 = smov 16  }
  0x1c   : > { %1287 = dma.hbm_to_vmem [thread:$0]  (!%p1630_p7), %s1980_s1, 1024, %s249_s15, [#allocation7], %s1533_s21, %s1533_s21, %s1534_s22  }
  0x1d   : > { %p32_p3 = scmp.eq.s32.totalorder %s31_s19, 0  ;;  %p41_p6 = scmp.ne.s32.totalorder %s1526_s11, %s1522_s10 }
  0x1e   : > { %p42_p8 = scmp.eq.s32.totalorder %s1530_s12, 0  ;;  %p1293_p9 = scmp.lt.s32.totalorder %s1530_s12, 2 }
  0x1f   : > { %s1652_s25 = scalar_select %p32_p3, %s1526_s11, %s34_s18  }
  0x20   : > { %p43_p10 = por %p42_p8, %p41_p6  ;;  %s277_s26 = sand.u32 1, %s1526_s11  }
  0x21   : > { %s1230_s27 = sshll.u32 %s277_s26, 6  ;;  %s1269_s28 = sshll.u32 %s1530_s12, 10 }
  0x22   : > { %s1659_s9 = scalar_lea.hbm %s1979_s0, %s1269_s28  ;;  %s281_s14 = scalar_lea.vmem [#allocation4], %s1230_s27 }
  0x23   : > { %s288_s15 = sshll.u32 %s281_s14, 4  ;;  %p1663_p7 = pnand %p1293_p9, %p43_p10  ;;  %s1661_s15 = int_to_ptr.vmem [resolvable:$true] %s288_s15 }
  0x24   : > { %s1667_s18 = scalar_lea.sflag [#allocation5], %s277_s26  ;;  %s1464_s12 = scalar_lea.hbm %s1659_s9, 1024 }
  0x25   : > { %p1465_p11 = scmp.ne.s32.totalorder %s1659_s9, %s1464_s12  ;;  %p1466_p12 = pneg %p1663_p7 }
  0x26   : > { %s1469_s21 = scalar_lea.hbm %s1979_s0, 2048  ;;  %p1470_p2 = scmp.lt.s32.totalorder %s1659_s9, %s1979_s0 }
  0x27   : > { %p1467_p13 = pnand %p1466_p12, %p1465_p11  ;;  %p1471_p3 = scmp.lt.s32.totalorder %s1469_s21, %s1464_s12 }
  0x29   : > { %p1468_p0 = pneg %p1467_p13  ;;  %p1472_p6 = por %p1471_p3, %p1470_p2 }
  0x2b   : > { %p1473_p8 = pnand %p1472_p6, %p1468_p0 }
  0x2d   : > { %1476 = shalt.err (!%p1473_p8)
}
  0x2e   : > { %s1477_s24 = scalar_lea.vmem %s1661_s15, 1024  ;;  %s1535_s26 = smov [#allocation4]  }
  0x2f   : > { %p1478_p9 = scmp.ne.s32.totalorder %s1661_s15, %s1477_s24  ;;  %s1482_s27 = sshll.u32 %s1535_s26, 4  ;;  %s1483_s27 = int_to_ptr.vmem [resolvable:$false] %s1482_s27 }
  0x30   : > { %s1484_s28 = scalar_lea.vmem %s1483_s27, 2048  ;;  %p1485_p13 = scmp.lt.s32.totalorder %s1661_s15, %s1483_s27 }
  0x31   : > { %p1480_p10 = pnand %p1478_p9, %p1466_p12  ;;  %p1486_p1 = scmp.lt.s32.totalorder %s1484_s28, %s1477_s24 }
  0x33   : > { %p1481_p11 = pneg %p1480_p10  ;;  %p1487_p4 = por %p1486_p1, %p1485_p13 }
  0x35   : > { %p1488_p5 = pnand %p1487_p4, %p1481_p11 }
  0x37   : > { %1491 = shalt.err (!%p1488_p5)
}
  0x38   : > { %s1536_s29 = smov 128   ;;  %s1537_s30 = smov 8  }
  0x39   : > { %1291 = dma.hbm_to_vmem [thread:$0]  (!%p1663_p7), %s1659_s9, 1024, %s1661_s15, %s1667_s18, %s1536_s29, %s1536_s29, %s1537_s30  }
  0x3a   : > { %p1995_p12 = scmp.ne.s32.totalorder %s1992_s13, 0 }
  0x3b   : > { %s302_s14 = sand.u32 (!%p1995_p12), 1, %s1522_s10   ;;  %p1996_p1 = scmp.ne.s32.totalorder (!%p1995_p12), %s1991_s6, 0 }
  0x3c   : > { %300 = sbr.rel (%p1995_p12) target bundleno = 1269 (0x4f5), region = 48  ;;  %s1234_s12 = sshll.u32 (!%p1995_p12), %s302_s14, 6 }
  0x3d   : > { %s303_s19 = scalar_lea.sflag (!%p1995_p12), [#allocation5], %s302_s14  ;;  %s1691_s20 = scalar_lea.vmem (!%p1995_p12), [#allocation4], %s1234_s12 }
  0x41   : > { %1509 = dma.done.wait (%p1996_p1), %s303_s19, 1024  }
  0x42   : > { %1511 = vsyncadd (%p1996_p1), %s303_s19, 4294966272  ;;  %p1997_p4 = scmp.eq.s32.totalorder %s1610_s4, 0 }
  0x44   : > { %1513 = dma.done.wait (%p1997_p4), [#allocation7], 1024   ;;  %p1998_p5 = pmov %p1997_p4 }
  0x45   : > { %v1538_v2 = vmov 0.0   ;;  %v370_v3 = vld [vmem:[#allocation6 + $0x38] sm:$0xff]  ;;  %v369_v4 = vld [vmem:[#allocation6 + $0x30] sm:$0xff]  ;;  %v368_v5 = vld [vmem:[#allocation6 + $0x28] sm:$0xff]  ;;  %vm383_vm0 = vcmask 261120   ;;  %v1539_v19 = vmov 0   ;;  %v373_v20 = vlaneseq }
  0x46   : > { %1515 = vsyncadd (%p1998_p5), [#allocation7], 4294966272  ;;  %472 = vmatprep.mubr.f32.mxu0 %v1538_v2  ;;  %496 = vmatprep.mubr.f32.mxu1 %v1538_v2  ;;  %v367_v6 = vld [vmem:[#allocation6 + $0x20] sm:$0xff]  ;;  %v366_v7 = vld [vmem:[#allocation6 + $0x18] sm:$0xff]  ;;  %vm676_vm1 = vcmask 1041409   ;;  %vm678_vm2 = vcmask 1042434  }
  0x47   : > { %432 = vmatprep.subr.mxu0 %v370_v3  ;;  %1270 = vmatprep.subr.mxu1 %v370_v3  ;;  %v365_v8 = vld [vmem:[#allocation6 + $0x10] sm:$0xff]  ;;  %v364_v9 = vld [vmem:[#allocation6 + $0x8] sm:$0xff]  ;;  %v363_v10 = vld [vmem:[#allocation6] sm:$0xff]  ;;  %v1742_v21 = vshrl.u32 %v373_v20, 7  ;;  %vm680_vm3 = vcmask 1043459   ;;  %vm682_vm4 = vcmask 1044484  }
  0x48   : > { %433 = vmatpush1.msra.mxu0 %v369_v4  ;;  %1274 = vmatpush1.msra.mxu1 %v369_v4  ;;  %v1702_v11 = vld [vmem:[%s1691_s20] sm:$0xff]  ;;  %v1712_v13 = vld [vmem:[%s1691_s20 + $0x8] sm:$0xff]  ;;  %v1722_v15 = vld [vmem:[%s1691_s20 + $0x10] sm:$0xff]  ;;  %vm684_vm5 = vcmask 1045509   ;;  %vm686_vm6 = vcmask 1046534   ;;  %vm688_vm7 = vcmask 1047559  }
  0x49   : > { %434 = vmatprep.subr.mxu0 %v368_v5  ;;  %1271 = vmatprep.subr.mxu1 %v368_v5  ;;  %v1705_v12 = vld [vmem:[%s1691_s20 + $0x20] sm:$0xff]  ;;  %v1715_v14 = vld [vmem:[%s1691_s20 + $0x28] sm:$0xff]  ;;  %v1725_v16 = vld [vmem:[%s1691_s20 + $0x30] sm:$0xff]  ;;  %v1745_v22 = vsub.s32 1, %v1742_v21  ;;  %v1752_v43 = vsub.s32 0, %v1742_v21  ;;  %vm691_vm8 = vcmask 64512  }
  0x4a   : > { %435 = vmatpush1.msra.mxu0 %v367_v6  ;;  %1275 = vmatpush1.msra.mxu1 %v367_v6  ;;  %v1732_v17 = vld [vmem:[%s1691_s20 + $0x18] sm:$0xff]  ;;  %p347_p7 = scmp.lt.s32.totalorder %s1610_s4, 1  ;;  %vm1021_vm9 = vcmask 7168  }
  0x4b   : > { %436 = vmatprep.subr.mxu0 %v366_v7  ;;  %1272 = vmatprep.subr.mxu1 %v366_v7  ;;  %v1735_v18 = vld [vmem:[%s1691_s20 + $0x38] sm:$0xff] }
  0x4c   : > { %437 = vmatpush1.msra.mxu0 %v365_v8  ;;  %1276 = vmatpush1.msra.mxu1 %v365_v8  ;;  %v371_v23 = vld [vmem:[%s1981_s2] sm:$0x3]  ;;  %s2004_s4 = smov (!%p347_p7, %s1610_s4), 1 }
  0x4d   : > { %438 = vmatprep.subr.mxu0 %v364_v9  ;;  %1273 = vmatprep.subr.mxu1 %v364_v9  ;;  %v380_v24 = vrot.slane %v371_v23, %v1745_v22  ;;  %v376_v52 = vrot.slane %v371_v23, %v1752_v43  ;;  %s1236_s16 = sshll.u32 %s2004_s4, 3 }
  0x4e   : > { %439 = vmatpush1.msra.mxu0 %v363_v10  ;;  %1277 = vmatpush1.msra.mxu1 %v363_v10  ;;  %s354_s22 = scalar_lea.vmem %s1986_s8, %s1236_s16  ;;  %s350_s28 = scalar_lea.vmem %s1985_s7, %s1236_s16 }
  0x4f   : > { %1238 = vmatmul.mubr.msk.f32.vlgmr.msra.gmra.mxu0 %vm383_vm0, %v1702_v11  ;;  %1242 = vmatmul.mubr.msk.f32.vlgmr.msra.gmra.mxu1 %vm383_vm0, %v1705_v12 }
  0x50   : > { %478 = vmatprep.mubr.f32.mxu0 %v1538_v2  ;;  %502 = vmatprep.mubr.f32.mxu1 %v1538_v2 }
  0x51   : > { %1334 = vset.pattern.permute.xlu0 %v1539_v19  ;;  %1335 = vset.pattern.permute.xlu1 %v1539_v19 }
  0x53   : > { %1239 = vmatmul.mubr.msk.f32.gmra.mxu0 %vm383_vm0, %v1712_v13  ;;  %1243 = vmatmul.mubr.msk.f32.gmra.mxu1 %vm383_vm0, %v1715_v14 }
  0x54   : > { %484 = vmatprep.mubr.f32.mxu0 %v1538_v2  ;;  %508 = vmatprep.mubr.f32.mxu1 %v1538_v2 }
  0x57   : > { %1240 = vmatmul.mubr.msk.f32.gmra.mxu0 %vm383_vm0, %v1722_v15  ;;  %1244 = vmatmul.mubr.msk.f32.gmra.mxu1 %vm383_vm0, %v1725_v16 }
  0x58   : > { %490 = vmatprep.mubr.f32.mxu0 %v1538_v2  ;;  %514 = vmatprep.mubr.f32.mxu1 %v1538_v2 }
  0x5b   : > { %1241 = vmatmul.mubr.msk.f32.gmra.mxu0 %vm383_vm0, %v1732_v17  ;;  %1245 = vmatmul.mubr.msk.f32.gmra.mxu1 %vm383_vm0, %v1735_v18 }
 0x10f   : > { %v474_v25 = vpop.f32.mrf.mxu0  ;;  %v498_v26 = vpop.f32.mrf.mxu1 }
 0x110   : > { %v475_v59 = vadd.f32 %v474_v25, %v376_v52  ;;  %v499_v62 = vadd.f32 %v498_v26, %v376_v52 }
 0x111   : > { %v476_v27 = vpop.f32.mrf.mxu0  ;;  %v500_v28 = vpop.f32.mrf.mxu1 }
 0x112   : > { %v477_v29 = vadd.f32 %v476_v27, %v380_v24  ;;  %v501_v30 = vadd.f32 %v500_v28, %v380_v24 }
 0x113   : > { %v480_v31 = vpop.f32.mrf.mxu0  ;;  %v504_v32 = vpop.f32.mrf.mxu1 }
 0x114   : > { %v1246_v33 = vmul.f32 -1.442695, %v477_v29  ;;  %v1250_v34 = vmul.f32 -1.442695, %v501_v30  ;;  %v505_v1 = vadd.f32 %v504_v32, %v376_v52  ;;  %v481_v4 = vadd.f32 %v480_v31, %v376_v52  ;;  %v1254_v32 = vld [vmem:[%s1982_s3] ss:$0 sm:$0xff] }
 0x115   : > { %v482_v35 = vpop.f32.mrf.mxu0  ;;  %v506_v36 = vpop.f32.mrf.mxu1 }
 0x116   : > { %1336 = vpow2.f32 %v1246_v33  ;;  %v483_v37 = vadd.f32 %v482_v35, %v380_v24  ;;  %v507_v38 = vadd.f32 %v506_v36, %v380_v24 }
 0x117   : > { %1338 = vpow2.f32 %v1250_v34  ;;  %v486_v39 = vpop.f32.mrf.mxu0  ;;  %v510_v40 = vpop.f32.mrf.mxu1 }
 0x118   : > { %v1247_v41 = vmul.f32 -1.442695, %v483_v37  ;;  %v1251_v42 = vmul.f32 -1.442695, %v507_v38  ;;  %v487_v7 = vadd.f32 %v486_v39, %v376_v52  ;;  %v511_v10 = vadd.f32 %v510_v40, %v376_v52 }
 0x119   : > { %v488_v44 = vpop.f32.mrf.mxu0  ;;  %v512_v45 = vpop.f32.mrf.mxu1 }
 0x11a   : > { %1340 = vpow2.f32 %v1247_v41  ;;  %v489_v46 = vadd.f32 %v488_v44, %v380_v24  ;;  %v513_v47 = vadd.f32 %v512_v45, %v380_v24 }
 0x11b   : > { %1342 = vpow2.f32 %v1251_v42  ;;  %v492_v48 = vpop.f32.mrf.mxu0  ;;  %v516_v49 = vpop.f32.mrf.mxu1 }
 0x11c   : > { %v1248_v50 = vmul.f32 -1.442695, %v489_v46  ;;  %v1252_v51 = vmul.f32 -1.442695, %v513_v47  ;;  %v517_v28 = vadd.f32 %v516_v49, %v376_v52 }
 0x11d   : > { %v494_v53 = vpop.f32.mrf.mxu0  ;;  %v518_v54 = vpop.f32.mrf.mxu1 }
 0x11e   : > { %1344 = vpow2.f32 %v1248_v50  ;;  %v495_v55 = vadd.f32 %v494_v53, %v380_v24  ;;  %v519_v56 = vadd.f32 %v518_v54, %v380_v24  ;;  %v493_v24 = vadd.f32 %v492_v48, %v376_v52 }
 0x11f   : > { %1346 = vpow2.f32 %v1252_v51 }
 0x120   : > { %v1249_v57 = vmul.f32 -1.442695, %v495_v55  ;;  %v1253_v58 = vmul.f32 -1.442695, %v519_v56 }
 0x122   : > { %1348 = vpow2.f32 %v1249_v57 }
 0x123   : > { %v1337_v60 = vpop.eup %1336  ;;  %1350 = vpow2.f32 %v1253_v58 }
 0x124   : > { %v1339_v61 = vpop.eup %1338  ;;  %v553_v63 = vadd.f32 1.0, %v1337_v60  ;;  %1352 = vtanh.f32 %v475_v59 }
 0x125   : > { %v557_v0 = vadd.f32 1.0, %v1339_v61 }
 0x126   : > { %1354 = vrcp.f32 %v553_v63 }
 0x127   : > { %v1341_v2 = vpop.eup %1340  ;;  %1356 = vrcp.f32 %v557_v0  ;;  %v1255_v0 = vld [vmem:[#allocation2] ss:$0 sm:$0xff] }
 0x128   : > { %v1343_v3 = vpop.eup %1342  ;;  %1358 = vtanh.f32 %v499_v62  ;;  %v554_v5 = vadd.f32 1.0, %v1341_v2 }
 0x129   : > { %1360 = vtanh.f32 %v505_v1  ;;  %v558_v6 = vadd.f32 1.0, %v1343_v3 }
 0x12a   : > { %1362 = vrcp.f32 %v554_v5 }
 0x12b   : > { %v1345_v8 = vpop.eup %1344  ;;  %1364 = vrcp.f32 %v558_v6  ;;  %v643_v6 = vand.u32 127, %v373_v20 }
 0x12c   : > { %v1347_v9 = vpop.eup %1346  ;;  %1366 = vtanh.f32 %v481_v4  ;;  %v555_v19 = vadd.f32 1.0, %v1345_v8 }
 0x12d   : > { %1368 = vtanh.f32 %v487_v7  ;;  %v559_v23 = vadd.f32 1.0, %v1347_v9  ;;  %v1760_v9 = vsub.s32 %v643_v6, %v1742_v21 }
 0x12e   : > { %1370 = vrcp.f32 %v555_v19 }
 0x12f   : > { %v1349_v25 = vpop.eup %1348  ;;  %1372 = vrcp.f32 %v559_v23 }
 0x130   : > { %v1351_v26 = vpop.eup %1350  ;;  %1374 = vtanh.f32 %v511_v10  ;;  %v556_v27 = vadd.f32 1.0, %v1349_v25 }
 0x131   : > { %1376 = vtanh.f32 %v493_v24  ;;  %v560_v29 = vadd.f32 1.0, %v1351_v26  ;;  %v1353_v30 = vpop.eup %1352 }
 0x132   : > { %1378 = vrcp.f32 %v556_v27 }
 0x133   : > { %v1355_v31 = vpop.eup %1354  ;;  %1380 = vrcp.f32 %v560_v29 }
 0x134   : > { %v1357_v33 = vpop.eup %1356  ;;  %v577_v34 = vmul.f32 %v1355_v31, %v1353_v30  ;;  %1382 = vtanh.f32 %v517_v28 }
 0x135   : > { %v1359_v35 = vpop.eup %1358 }
 0x136   : > { %v1361_v36 = vpop.eup %1360  ;;  %v592_v37 = vmul.f32 %v1254_v32, %v577_v34  ;;  %v581_v38 = vmul.f32 %v1359_v35, %v1357_v33 }
 0x137   : > { %v1363_v39 = vpop.eup %1362 }
 0x138   : > { %v1365_v40 = vpop.eup %1364  ;;  %600 = vadd.xlane.f32.xlu0 %v592_v37  ;;  %v596_v45 = vmul.f32 %v1254_v32, %v581_v38 }
 0x139   : > { %v1367_v41 = vpop.eup %1366  ;;  %v582_v42 = vmul.f32 %v1365_v40, %v1361_v36 }
 0x13a   : > { %v1369_v44 = vpop.eup %1368  ;;  %v578_v46 = vmul.f32 %v1367_v41, %v1363_v39 }
 0x13b   : > { %v1371_v47 = vpop.eup %1370  ;;  %v597_v48 = vmul.f32 %v1254_v32, %v582_v42 }
 0x13c   : > { %v1373_v49 = vpop.eup %1372  ;;  %608 = vadd.xlane.f32.xlu0 %v596_v45  ;;  %v579_v50 = vmul.f32 %v1371_v47, %v1369_v44  ;;  %v593_v54 = vmul.f32 %v1254_v32, %v578_v46 }
 0x13d   : > { %v1375_v51 = vpop.eup %1374  ;;  %610 = vadd.xlane.f32.xlu1 %v597_v48 }
 0x13e   : > { %v1377_v52 = vpop.eup %1376  ;;  %v594_v53 = vmul.f32 %v1254_v32, %v579_v50  ;;  %v583_v55 = vmul.f32 %v1375_v51, %v1373_v49 }
 0x13f   : > { %v1379_v56 = vpop.eup %1378 }
 0x140   : > { %v1381_v57 = vpop.eup %1380  ;;  %602 = vadd.xlane.f32.xlu0 %v593_v54  ;;  %v580_v58 = vmul.f32 %v1379_v56, %v1377_v52  ;;  %v598_v61 = vmul.f32 %v1254_v32, %v583_v55 }
 0x141   : > { %604 = vadd.xlane.f32.xlu1 %v594_v53  ;;  %v1383_v59 = vpop.eup %1382 }
 0x142   : > { %v595_v60 = vmul.f32 %v1254_v32, %v580_v58  ;;  %v584_v62 = vmul.f32 %v1383_v59, %v1381_v57 }
 0x144   : > { %612 = vadd.xlane.f32.xlu0 %v598_v61  ;;  %v599_v63 = vmul.f32 %v1254_v32, %v584_v62 }
 0x145   : > { %606 = vadd.xlane.f32.xlu1 %v595_v60 }
 0x149   : > { %614 = vadd.xlane.f32.xlu1 %v599_v63 }
 0x15a   : > { %623 = vperm.xlu0 %1334, %v1255_v0  }
 0x1c1   : > { %v601_v1 = vpop.xlane.xlu0 %600 }
 0x1c5   : > { %v609_v2 = vpop.xlane.xlu0 %608 }
 0x1c6   : > { %v611_v3 = vpop.xlane.xlu1 %610 }
 0x1c9   : > { %v603_v4 = vpop.xlane.xlu0 %602 }
 0x1ca   : > { %v605_v5 = vpop.xlane.xlu1 %604 }
 0x1cd   : > { %v613_v7 = vpop.xlane.xlu0 %612 }
 0x1ce   : > { %v607_v8 = vpop.xlane.xlu1 %606 }
 0x1d2   : > { %v615_v28 = vpop.xlane.xlu1 %614 }
 0x1d5   : > { %v624_v10 = vpop.permute.xlu0 %623 }
 0x1d6   : > { %v1762_v19 = vadd.f32 %v624_v10, %v601_v1  ;;  %v1764_v23 = vadd.f32 %v624_v10, %v603_v4  ;;  %v1766_v24 = vadd.f32 %v624_v10, %v605_v5  ;;  %v1768_v25 = vadd.f32 %v624_v10, %v607_v8 }
 0x1d7   : > { %v1770_v26 = vadd.f32 %v624_v10, %v609_v2  ;;  %v1772_v20 = vadd.f32 %v624_v10, %v611_v3  ;;  %v1774_v27 = vadd.f32 %v624_v10, %v613_v7  ;;  %v1781_v33 = vadd.f32 %v624_v10, %v615_v28 }
 0x1d8   : > { %v1259_v29 = vmul.f32 -1.442695, %v1762_v19  ;;  %v1260_v30 = vmul.f32 -1.442695, %v1764_v23  ;;  %v1261_v31 = vmul.f32 -1.442695, %v1766_v24  ;;  %v647_v32 = vrot.slane %v1762_v19, %v1760_v9 }
 0x1d9   : > { %v651_v34 = vrot.slane %v1764_v23, %v1760_v9  ;;  %v655_v35 = vrot.slane %v1766_v24, %v1760_v9  ;;  %v659_v36 = vrot.slane %v1768_v25, %v1760_v9  ;;  %v663_v37 = vrot.slane %v1770_v26, %v1760_v9 }
 0x1da   : > { %1384 = vpow2.f32 %v1259_v29  ;;  %v1262_v39 = vmul.f32 -1.442695, %v1768_v25  ;;  %v1263_v40 = vmul.f32 -1.442695, %v1770_v26  ;;  %v1264_v42 = vmul.f32 -1.442695, %v1772_v20 }
 0x1db   : > { %1386 = vpow2.f32 %v1260_v30  ;;  %v677_v38 = vsel %vm676_vm1, %v651_v34, %v647_v32  ;;  %v1265_v44 = vmul.f32 -1.442695, %v1774_v27  ;;  %v667_v45 = vrot.slane %v1772_v20, %v1760_v9 }
 0x1dc   : > { %1388 = vpow2.f32 %v1261_v31  ;;  %v679_v41 = vsel %vm678_vm2, %v655_v35, %v677_v38  ;;  %v1266_v47 = vmul.f32 -1.442695, %v1781_v33  ;;  %v671_v48 = vrot.slane %v1774_v27, %v1760_v9 }
 0x1dd   : > { %v681_v46 = vsel %vm680_vm3, %v659_v36, %v679_v41  ;;  %1390 = vpow2.f32 %v1262_v39  ;;  %v675_v50 = vrot.slane %v1781_v33, %v1760_v9 }
 0x1de   : > { %v683_v49 = vsel %vm682_vm4, %v663_v37, %v681_v46  ;;  %1392 = vpow2.f32 %v1263_v40 }
 0x1df   : > { %v685_v51 = vsel %vm684_vm5, %v667_v45, %v683_v49  ;;  %1394 = vpow2.f32 %v1264_v42 }
 0x1e0   : > { %v687_v52 = vsel %vm686_vm6, %v671_v48, %v685_v51  ;;  %1396 = vpow2.f32 %v1265_v44  ;;  %v706_v51 = vsub.s32 2, %v1742_v21 }
 0x1e1   : > { %v689_v53 = vsel %vm688_vm7, %v675_v50, %v687_v52  ;;  %1398 = vpow2.f32 %v1266_v47  ;;  %v726_v50 = vsub.s32 7, %v1742_v21 }
 0x1e2   : > { %v692_v54 = vsel %vm691_vm8, %v689_v53, -inf }
 0x1e3   : > { %693 = vmax.xlane.f32.xlu1 %v692_v54 }
 0x1e7   : > { %v1385_v55 = vpop.eup %1384 }
 0x1e8   : > { %v1387_v56 = vpop.eup %1386  ;;  %v1047_v57 = vadd.f32 1.0, %v1385_v55 }
 0x1e9   : > { %v1389_v58 = vpop.eup %1388  ;;  %v1048_v59 = vadd.f32 1.0, %v1387_v56  ;;  %v710_v56 = vsub.s32 3, %v1742_v21 }
 0x1ea   : > { %v1391_v60 = vpop.eup %1390  ;;  %v1049_v61 = vadd.f32 1.0, %v1389_v58  ;;  %1400 = vrcp.f32 %v1047_v57 }
 0x1eb   : > { %v1393_v62 = vpop.eup %1392  ;;  %1402 = vrcp.f32 %v1048_v59  ;;  %v1050_v63 = vadd.f32 1.0, %v1391_v60 }
 0x1ec   : > { %v1395_v0 = vpop.eup %1394  ;;  %1404 = vrcp.f32 %v1049_v61  ;;  %v1051_v1 = vadd.f32 1.0, %v1393_v62  ;;  %v714_v61 = vsub.s32 4, %v1742_v21 }
 0x1ed   : > { %v1397_v2 = vpop.eup %1396  ;;  %v1052_v3 = vadd.f32 1.0, %v1395_v0  ;;  %1406 = vrcp.f32 %v1050_v63 }
 0x1ee   : > { %v1399_v4 = vpop.eup %1398  ;;  %v1053_v5 = vadd.f32 1.0, %v1397_v2  ;;  %1408 = vrcp.f32 %v1051_v1  ;;  %v718_v2 = vsub.s32 5, %v1742_v21 }
 0x1ef   : > { %v1054_v6 = vadd.f32 1.0, %v1399_v4  ;;  %1410 = vrcp.f32 %v1052_v3 }
 0x1f0   : > { %1412 = vrcp.f32 %v1053_v5  ;;  %v722_v5 = vsub.s32 6, %v1742_v21 }
 0x1f1   : > { %1414 = vrcp.f32 %v1054_v6 }
 0x1f7   : > { %v1401_v7 = vpop.eup %1400 }
 0x1f8   : > { %v1403_v8 = vpop.eup %1402  ;;  %v1082_v10 = vrot.slane %v1401_v7, %v1760_v9 }
 0x1f9   : > { %v1405_v28 = vpop.eup %1404  ;;  %v1086_v29 = vrot.slane %v1403_v8, %v1760_v9 }
 0x1fa   : > { %v1407_v30 = vpop.eup %1406  ;;  %v1090_v31 = vrot.slane %v1405_v28, %v1760_v9 }
 0x1fb   : > { %v1409_v32 = vpop.eup %1408  ;;  %v1094_v34 = vrot.slane %v1407_v30, %v1760_v9  ;;  %v1111_v35 = vsel %vm676_vm1, %v1086_v29, %v1082_v10 }
 0x1fc   : > { %v1411_v36 = vpop.eup %1410  ;;  %v1098_v37 = vrot.slane %v1409_v32, %v1760_v9  ;;  %v1112_v38 = vsel %vm678_vm2, %v1090_v31, %v1111_v35 }
 0x1fd   : > { %v1413_v39 = vpop.eup %1412  ;;  %v1102_v40 = vrot.slane %v1411_v36, %v1760_v9  ;;  %v1113_v41 = vsel %vm680_vm3, %v1094_v34, %v1112_v38  ;;  %v1256_v36 = vld [vmem:[%s1984_s5] ss:$0 sm:$0xff] }
 0x1fe   : > { %v1415_v42 = vpop.eup %1414  ;;  %v1106_v44 = vrot.slane %v1413_v39, %v1760_v9  ;;  %v1114_v45 = vsel %vm682_vm4, %v1098_v37, %v1113_v41  ;;  %v892_v37 = vmul.f32 %v1256_v36, %v1702_v11  ;;  %v893_v39 = vmul.f32 %v1256_v36, %v1712_v13 }
 0x1ff   : > { %v1110_v46 = vrot.slane %v1415_v42, %v1760_v9  ;;  %v1115_v47 = vsel %vm684_vm5, %v1102_v40, %v1114_v45  ;;  %v895_v41 = vmul.f32 %v1256_v36, %v1732_v17 }
 0x200   : > { %v1116_v48 = vsel %vm686_vm6, %v1106_v44, %v1115_v47  ;;  %v900_v38 = vsel %vm383_vm0, %v892_v37, 0.0  ;;  %v903_v40 = vsel %vm383_vm0, %v893_v39, 0.0  ;;  %v897_v44 = vmul.f32 %v1256_v36, %v1715_v14 }
 0x201   : > { %v1117_v49 = vsel %vm688_vm7, %v1110_v46, %v1116_v48  ;;  %v909_v42 = vsel %vm383_vm0, %v895_v41, 0.0  ;;  %v899_v46 = vmul.f32 %v1256_v36, %v1735_v18 }
 0x202   : > { %1119 = vst.msk [vmem:[%s354_s22] sm:$0xff] %vm691_vm8, %v1117_v49  ;;  %v915_v45 = vsel %vm383_vm0, %v897_v44, 0.0 }
 0x203   : > { %v921_v11 = vsel %vm383_vm0, %v899_v46, 0.0 }
 0x26c   : > { %v694_v52 = vpop.xlane.xlu1 %693 }
 0x26d   : > { %v699_v53 = vrot.slane %v694_v52, %v1752_v43  ;;  %v703_v54 = vrot.slane %v694_v52, %v1745_v22  ;;  %v727_v55 = vrot.slane %v694_v52, %v726_v50  ;;  %v707_v57 = vrot.slane %v694_v52, %v706_v51 }
 0x26e   : > { %v711_v63 = vrot.slane %v694_v52, %v710_v56  ;;  %v723_v7 = vrot.slane %v694_v52, %v722_v5 }
 0x26f   : > { %v736_v58 = vsub.f32 %v1762_v19, %v699_v53  ;;  %v737_v59 = vsub.f32 %v1764_v23, %v703_v54  ;;  %v743_v62 = vsub.f32 %v1781_v33, %v727_v55  ;;  %v738_v0 = vsub.f32 %v1766_v24, %v707_v57 }
 0x270   : > { %v715_v19 = vrot.slane %v694_v52, %v714_v61  ;;  %v739_v23 = vsub.f32 %v1768_v25, %v711_v63  ;;  %v719_v33 = vrot.slane %v694_v52, %v718_v2  ;;  %v742_v28 = vsub.f32 %v1774_v27, %v723_v7 }
 0x271   : > { %v744_v60 = vmul.f32 1.442695, %v736_v58  ;;  %v746_v1 = vmul.f32 1.442695, %v737_v59  ;;  %v758_v3 = vmul.f32 1.442695, %v743_v62  ;;  %v896_v7 = vmul.f32 %v1256_v36, %v1705_v12 }
 0x272   : > { %v748_v4 = vmul.f32 1.442695, %v738_v0  ;;  %v740_v24 = vsub.f32 %v1770_v26, %v715_v19  ;;  %v750_v6 = vmul.f32 1.442695, %v739_v23  ;;  %v741_v8 = vsub.f32 %v1772_v20, %v719_v33 }
 0x273   : > { %1416 = vpow2.f32 %v744_v60  ;;  %v756_v31 = vmul.f32 1.442695, %v742_v28 }
 0x274   : > { %1418 = vpow2.f32 %v746_v1  ;;  %v752_v10 = vmul.f32 1.442695, %v740_v24  ;;  %v754_v29 = vmul.f32 1.442695, %v741_v8  ;;  %v912_v8 = vsel %vm383_vm0, %v896_v7, 0.0 }
 0x275   : > { %1420 = vpow2.f32 %v758_v3 }
 0x276   : > { %1422 = vpow2.f32 %v748_v4  ;;  %v894_v4 = vmul.f32 %v1256_v36, %v1722_v15 }
 0x277   : > { %1424 = vpow2.f32 %v750_v6 }
 0x278   : > { %1426 = vpow2.f32 %v752_v10  ;;  %v906_v6 = vsel %vm383_vm0, %v894_v4, 0.0  ;;  %v898_v10 = vmul.f32 %v1256_v36, %v1725_v16 }
 0x279   : > { %1428 = vpow2.f32 %v754_v29 }
 0x27a   : > { %1430 = vpow2.f32 %v756_v31  ;;  %v918_v28 = vsel %vm383_vm0, %v898_v10, 0.0 }
 0x280   : > { %v1863_v25 = vpop.eup %1416 }
 0x281   : > { %769 = vperm.xlu1 %1335, %v1863_v25   ;;  %v1867_v30 = vpop.eup %1418 }
 0x282   : > { %v1870_v26 = vpop.eup %1420 }
 0x283   : > { %v1872_v32 = vpop.eup %1422  ;;  %790 = vperm.xlu0 %1334, %v1870_v26  }
 0x284   : > { %v1876_v20 = vpop.eup %1424 }
 0x285   : > { %772 = vperm.xlu1 %1335, %v1867_v30   ;;  %v1879_v27 = vpop.eup %1426 }
 0x286   : > { %v1882_v34 = vpop.eup %1428 }
 0x287   : > { %v1885_v35 = vpop.eup %1430 }
 0x289   : > { %775 = vperm.xlu1 %1335, %v1872_v32  }
 0x28d   : > { %778 = vperm.xlu1 %1335, %v1876_v20  }
 0x291   : > { %781 = vperm.xlu1 %1335, %v1879_v27  }
 0x295   : > { %784 = vperm.xlu1 %1335, %v1882_v34  }
 0x299   : > { %787 = vperm.xlu1 %1335, %v1885_v35  }
 0x2a2   : > { %901 = vadd.xlane.f32.xlu0 %v900_v38 }
 0x2a6   : > { %904 = vadd.xlane.f32.xlu0 %v903_v40 }
 0x2aa   : > { %910 = vadd.xlane.f32.xlu0 %v909_v42 }
 0x2ae   : > { %916 = vadd.xlane.f32.xlu0 %v915_v45 }
 0x2b2   : > { %922 = vadd.xlane.f32.xlu0 %v921_v11 }
 0x2fc   : > { %v770_v13 = vpop.permute.xlu1 %769 }
 0x2fd   : > { %v795_v14 = vrot.slane %v770_v13, %v1760_v9 }
 0x2fe   : > { %v791_v59 = vpop.permute.xlu0 %790 }
 0x2ff   : > { %v823_v3 = vrot.slane %v791_v59, %v1760_v9 }
 0x300   : > { %v773_v47 = vpop.permute.xlu1 %772 }
 0x301   : > { %v799_v17 = vrot.slane %v773_v47, %v1760_v9 }
 0x303   : > { %v824_v57 = vsel %vm676_vm1, %v799_v17, %v795_v14 }
 0x304   : > { %v776_v48 = vpop.permute.xlu1 %775 }
 0x305   : > { %v803_v53 = vrot.slane %v776_v48, %v1760_v9 }
 0x307   : > { %v825_v60 = vsel %vm678_vm2, %v803_v53, %v824_v57 }
 0x308   : > { %v779_v49 = vpop.permute.xlu1 %778 }
 0x309   : > { %v807_v54 = vrot.slane %v779_v49, %v1760_v9 }
 0x30b   : > { %v826_v62 = vsel %vm680_vm3, %v807_v54, %v825_v60 }
 0x30c   : > { %v782_v52 = vpop.permute.xlu1 %781 }
 0x30d   : > { %v811_v18 = vrot.slane %v782_v52, %v1760_v9 }
 0x30f   : > { %v827_v0 = vsel %vm682_vm4, %v811_v18, %v826_v62 }
 0x310   : > { %v785_v55 = vpop.permute.xlu1 %784 }
 0x311   : > { %v815_v58 = vrot.slane %v785_v55, %v1760_v9 }
 0x313   : > { %v828_v19 = vsel %vm684_vm5, %v815_v58, %v827_v0 }
 0x314   : > { %v788_v63 = vpop.permute.xlu1 %787 }
 0x315   : > { %v819_v1 = vrot.slane %v788_v63, %v1760_v9 }
 0x317   : > { %v829_v23 = vsel %vm686_vm6, %v819_v1, %v828_v19 }
 0x318   : > { %v830_v33 = vsel %vm688_vm7, %v823_v3, %v829_v23 }
 0x319   : > { %v832_v24 = vsel %vm691_vm8, %v830_v33, 0.0 }
 0x31a   : > { %833 = vadd.xlane.f32.xlu1 %v832_v24 }
 0x31e   : > { %907 = vadd.xlane.f32.xlu1 %v906_v6  ;;  %v1257_v6 = vld [vmem:[#allocation3] ss:$0 sm:$0xff] }
 0x322   : > { %913 = vadd.xlane.f32.xlu1 %v912_v8 }
 0x326   : > { %919 = vadd.xlane.f32.xlu1 %v918_v28 }
 0x32b   : > { %v902_v15 = vpop.xlane.xlu0 %901 }
 0x32f   : > { %v905_v38 = vpop.xlane.xlu0 %904 }
 0x333   : > { %v911_v11 = vpop.xlane.xlu0 %910 }
 0x3a3   : > { %v834_v29 = vpop.xlane.xlu1 %833 }
 0x3a4   : > { %1432 = vrcp.f32 %v834_v29 }
 0x3a7   : > { %v908_v31 = vpop.xlane.xlu1 %907 }
 0x3ab   : > { %v914_v44 = vpop.xlane.xlu1 %913 }
 0x3af   : > { %v920_v47 = vpop.xlane.xlu1 %919 }
 0x3b1   : > { %v1433_v37 = vpop.eup %1432 }
 0x3b2   : > { %v840_v39 = vrot.slane %v1433_v37, %v1752_v43  ;;  %v844_v40 = vrot.slane %v1433_v37, %v1745_v22  ;;  %v848_v12 = vrot.slane %v1433_v37, %v706_v51  ;;  %v856_v16 = vrot.slane %v1433_v37, %v714_v61 }
 0x3b3   : > { %v852_v42 = vrot.slane %v1433_v37, %v710_v56  ;;  %v864_v45 = vrot.slane %v1433_v37, %v722_v5  ;;  %v860_v61 = vrot.slane %v1433_v37, %v718_v2  ;;  %v917_v5 = vpop.xlane.xlu0 %916 }
 0x3b4   : > { %v877_v36 = vmul.f32 %v1863_v25, %v840_v39  ;;  %v878_v41 = vmul.f32 %v1867_v30, %v844_v40  ;;  %v879_v22 = vmul.f32 %v1872_v32, %v848_v12  ;;  %v881_v51 = vmul.f32 %v1879_v27, %v856_v16 }
 0x3b5   : > { %v880_v25 = vmul.f32 %v1876_v20, %v852_v42  ;;  %v883_v13 = vmul.f32 %v1885_v35, %v864_v45  ;;  %v882_v32 = vmul.f32 %v1882_v34, %v860_v61  ;;  %v868_v27 = vrot.slane %v1433_v37, %v726_v50 }
 0x3b6   : > { %v924_v43 = vmul.f32 %v902_v15, %v877_v36  ;;  %v925_v46 = vmul.f32 %v905_v38, %v878_v41  ;;  %v926_v30 = vmul.f32 %v908_v31, %v879_v22  ;;  %v928_v56 = vmul.f32 %v914_v44, %v881_v51 }
 0x3b7   : > { %v927_v48 = vmul.f32 %v911_v11, %v880_v25  ;;  %v930_v49 = vmul.f32 %v920_v47, %v883_v13  ;;  %v929_v2 = vmul.f32 %v917_v5, %v882_v32  ;;  %v884_v20 = vmul.f32 %v1870_v26, %v868_v27  ;;  %v923_v52 = vpop.xlane.xlu0 %922 }
 0x3b8   : > { %944 = vperm.xlu0 %1334, %v925_v46   ;;  %941 = vperm.xlu1 %1335, %v924_v43  }
 0x3b9   : > { %v931_v17 = vmul.f32 %v923_v52, %v884_v20 }
 0x3bc   : > { %947 = vperm.xlu1 %1335, %v926_v30   ;;  %953 = vperm.xlu0 %1334, %v928_v56  }
 0x3c0   : > { %950 = vperm.xlu1 %1335, %v927_v48   ;;  %959 = vperm.xlu0 %1334, %v930_v49  }
 0x3c4   : > { %956 = vperm.xlu1 %1335, %v929_v2  }
 0x3c8   : > { %962 = vperm.xlu1 %1335, %v931_v17  }
 0x433   : > { %v942_v35 = vpop.permute.xlu1 %941  ;;  %v945_v53 = vpop.permute.xlu0 %944 }
 0x434   : > { %v971_v54 = vrot.slane %v945_v53, %v1760_v9  ;;  %v967_v34 = vrot.slane %v942_v35, %v1760_v9 }
 0x436   : > { %v996_v18 = vsel %vm676_vm1, %v971_v54, %v967_v34 }
 0x437   : > { %v948_v14 = vpop.permute.xlu1 %947  ;;  %v954_v50 = vpop.permute.xlu0 %953 }
 0x438   : > { %v975_v21 = vrot.slane %v948_v14, %v1760_v9  ;;  %v983_v59 = vrot.slane %v954_v50, %v1760_v9 }
 0x43a   : > { %v997_v26 = vsel %vm678_vm2, %v975_v21, %v996_v18 }
 0x43b   : > { %v951_v55 = vpop.permute.xlu1 %950  ;;  %v960_v62 = vpop.permute.xlu0 %959 }
 0x43c   : > { %v979_v57 = vrot.slane %v951_v55, %v1760_v9  ;;  %v991_v3 = vrot.slane %v960_v62, %v1760_v9 }
 0x43e   : > { %v998_v58 = vsel %vm680_vm3, %v979_v57, %v997_v26 }
 0x43f   : > { %v957_v60 = vpop.permute.xlu1 %956  ;;  %v999_v0 = vsel %vm682_vm4, %v983_v59, %v998_v58 }
 0x440   : > { %v987_v63 = vrot.slane %v957_v60, %v1760_v9 }
 0x442   : > { %v1000_v1 = vsel %vm684_vm5, %v987_v63, %v999_v0 }
 0x443   : > { %v963_v19 = vpop.permute.xlu1 %962  ;;  %v1001_v4 = vsel %vm686_vm6, %v991_v3, %v1000_v1 }
 0x444   : > { %v995_v23 = vrot.slane %v963_v19, %v1760_v9 }
 0x446   : > { %v1002_v33 = vsel %vm688_vm7, %v995_v23, %v1001_v4 }
 0x447   : > { %v1004_v24 = vsel %vm691_vm8, %v1002_v33, 0.0 }
 0x448   : > { %1005 = vadd.xlane.f32.xlu0 %v1004_v24 }
 0x4d1   : > { %v1006_v7 = vpop.xlane.xlu0 %1005 }
 0x4d2   : > { %v1014_v8 = vadd.f32 %v1257_v6, %v1006_v7 }
 0x4d4   : > { %v1258_v10 = vmul.f32 -1.442695, %v1014_v8 }
 0x4d6   : > { %1434 = vpow2.f32 %v1258_v10 }
 0x4e3   : > { %v1435_v28 = vpop.eup %1434 }
 0x4e4   : > { %v1018_v29 = vadd.f32 1.0, %v1435_v28 }
 0x4e6   : > { %1436 = vrcp.f32 %v1018_v29 }
 0x4f3   : > { %v1437_v9 = vpop.eup %1436 }
 0x4f4   : > { %1022 = vst.msk [vmem:[%s350_s28] sm:$0xff] %vm1021_vm9, %v1437_v9 }
 0x4f5 PF: > { %p24_p0 = scmp.ge.s32.totalorder %s1635_s17, 4   ;;  %s1999_s9 = smov %s1522_s10 }
 0x4f6   : > { %s2000_s10 = smov %s1526_s11  ;;  %s2001_s11 = smov %s1652_s25 }
 0x4f7   : > { %s2002_s12 = smov %s1635_s17  ;;  %26 = sbr.rel (!%p24_p0) target bundleno = 7 (0x7), region = 104 }
 0x4fc   :  { %1153 = vsyncpa [#allocation5], 1 }
 0x4fd   :  { %1155 = vsyncpa [#allocation5 + $0x1], 1 }
 0x4fe   :  { %1156 = vsyncpa [#allocation7], 1 }

</bundles_post_ra>
